<compile_context>
chip_gen: v7x
topology: tpu7x:2x2x1
jax: 0.10.0
libtpu: 0.0.40
codegen_flags: <defaults>
</compile_context>

<pallas_src>
import math

import jax
import jax.numpy as jnp
from jax.experimental import pallas as pl
from jax.experimental.pallas import tpu as pltpu

N_QUBITS = 4
N_LAYERS = 3
DIM = 1 << N_QUBITS      # 16
DIM2 = 2 * DIM           # 32  ([re | im] planes stacked on the sublane axis)
LANE = 128               # f32 lane width (batch axis after the transpose)


# ----------------------------------------------------------------------------
# Pallas kernel: full forward pass for one batch tile (batch on lanes).
# ----------------------------------------------------------------------------
def hybrid_kernel(x_ref, bit_ref, u_ref, zw1_ref, b1_ref, w2_ref, b2_ref, o_ref):
    x = x_ref[...]                                   # (4, TB) input angles
    cx = jnp.cos(x * 0.5)                            # (4, TB)
    sx = jnp.sin(x * 0.5)
    d = sx - cx                                      # hoisted once (4, TB)

    bit = bit_ref[...]                               # (32, 4) wire-q bit of basis idx, dup over [re|im]

    # AngleEmbedding product-state magnitude, (32, TB), VPU only:
    #   amp[b, :] = prod_q (cos(x_q/2) if bit_q(b)==0 else sin(x_q/2))
    amp = cx[0:1, :] + d[0:1, :] * bit[:, 0:1]
    for q in range(1, N_QUBITS):
        amp = amp * (cx[q:q + 1, :] + d[q:q + 1, :] * bit[:, q:q + 1])

    # All three entangler layers + (-i)^popcount phase folded into one real
    # (32, 32) matmul via the [[Ur,Ui],[-Ui,Ur]] block trick (transposed).
    psi = jnp.dot(u_ref[...], amp, preferred_element_type=jnp.float32)     # (32, TB)

    # probs -> PauliZ expectations -> Linear1 (folded), ReLU, Linear2.
    sq = psi * psi                                                          # (32, TB) = [re^2 | im^2]
    h = jnp.dot(zw1_ref[...], sq, preferred_element_type=jnp.float32) + b1_ref[...]
    h = jnp.maximum(h, 0.0)                                                 # (4, TB)
    out = jnp.dot(w2_ref[...], h, preferred_element_type=jnp.float32) + b2_ref[...]
    o_ref[...] = out.astype(o_ref.dtype)


# ----------------------------------------------------------------------------
# Gate tables (trace-time constants).
# ----------------------------------------------------------------------------
def _gate_tables():
    idx = jnp.arange(DIM)

    def perm_matrix(perm):
        # (v @ M)[j] = v[perm[j]]
        return jnp.zeros((DIM, DIM), jnp.float32).at[perm, idx].set(1.0)

    # wire q -> bit (N_QUBITS-1-q)  (PennyLane: wire 0 = MSB)
    xorm = [perm_matrix(idx ^ (1 << (N_QUBITS - 1 - q))) for q in range(N_QUBITS)]

    cnotm = []
    for q in range(N_QUBITS):
        ctrl_bit = N_QUBITS - 1 - q
        tgt_bit = N_QUBITS - 1 - ((q + 1) % N_QUBITS)
        ctrl = (idx >> ctrl_bit) & 1
        perm = jnp.where(ctrl == 1, idx ^ (1 << tgt_bit), idx)
        cnotm.append(perm_matrix(perm))
    return xorm, cnotm


def _build_constants(q_weights, w1, b1, w2, b2):
    xorm, cnotm = _gate_tables()
    q_weights = q_weights.astype(jnp.float32)

    # Compose the 3 BasicEntanglerLayers into one 16x16 complex unitary in
    # row-application form: state_row_new = state_row @ (u_re + i*u_im).  f32.
    cw = jnp.cos(q_weights * 0.5)
    sw = jnp.sin(q_weights * 0.5)
    u_re = jnp.eye(DIM, dtype=jnp.float32)
    u_im = jnp.zeros((DIM, DIM), jnp.float32)
    for l in range(N_LAYERS):
        for q in range(N_QUBITS):
            c, s = cw[l, q], sw[l, q]
            re_p, im_p = u_re @ xorm[q], u_im @ xorm[q]
            u_re, u_im = c * u_re + s * im_p, c * u_im - s * re_p
        for q in range(N_QUBITS):
            u_re, u_im = u_re @ cnotm[q], u_im @ cnotm[q]
    big_u = jnp.concatenate(
        [jnp.concatenate([u_re, u_im], axis=1),
         jnp.concatenate([-u_im, u_re], axis=1)], axis=0)        # (32, 32)

    # Basis-index bit of wire q, duplicated over the [re|im] halves.
    bit1 = jnp.array([[(b >> (N_QUBITS - 1 - q)) & 1 for b in range(DIM)]
                      for q in range(N_QUBITS)], jnp.float32)    # (4, 16)
    bit1_32 = jnp.concatenate([bit1, bit1], axis=1)              # (4, 32)
    bit_t = bit1_32.T                                            # (32, 4)

    # (-i)^popcount(b) phase of the AngleEmbedding product state, folded into U
    # as a diagonal row pre-scale (state = amp*sign; psi = state@U = amp@(diag(sign)@U)).
    pr = [1.0, 0.0, -1.0, 0.0]
    pi_ = [0.0, -1.0, 0.0, 1.0]
    pop = [bin(b).count("1") % 4 for b in range(DIM)]
    sign32 = jnp.array([pr[p] for p in pop] + [pi_[p] for p in pop],
                       jnp.float32).reshape(DIM2, 1)             # (32, 1)
    u_t = (sign32 * big_u).T                                     # (32, 32)  transposed for psi^T = U^T @ amp^T

    # Fold PauliZ readout into the first Linear: h = probs @ (zsign @ W1^T) + b1,
    # with re^2+im^2 folded by stacking zw1 twice; transposed for the lane layout.
    zsign = (1.0 - 2.0 * bit1).T                                 # (16, 4)
    zw1 = zsign @ w1.astype(jnp.float32).T                       # (16, 4)
    zw1_t = jnp.concatenate([zw1, zw1], axis=0).T                # (4, 32)

    b1_t = b1.reshape(-1, 1).astype(jnp.float32)                 # (4, 1)
    w2f = w2.astype(jnp.float32)                                 # (4, 4)   out^T = W2 @ h^T + b2
    b2_t = b2.reshape(-1, 1).astype(jnp.float32)                 # (4, 1)
    return bit_t, u_t, zw1_t, b1_t, w2f, b2_t


# ----------------------------------------------------------------------------
# pallas_call wrapper with a lane-dense batch grid.
# ----------------------------------------------------------------------------
def hybrid_forward(x, q_weights, w1, b1, w2, b2, tile_b=2048):
    consts = _build_constants(q_weights, w1, b1, w2, b2)
    x = x.astype(jnp.float32)
    B = x.shape[0]

    # Batch is the lane axis after the transpose -> tile must be a multiple of 128.
    padded_min = ((B + LANE - 1) // LANE) * LANE
    tb = max(LANE, (min(tile_b, padded_min) // LANE) * LANE)
    # If the whole batch would fit in a single tile but spans >=2 lane groups,
    # split it so the grid has >=2 programs (v7x: both TensorCores get work).
    if tb >= padded_min and padded_min >= 2 * LANE:
        tb = ((padded_min // 2 + LANE - 1) // LANE) * LANE
    padded = ((B + tb - 1) // tb) * tb

    x_t = x.T                                                    # (4, B) layout plumbing in XLA
    if padded != B:
        x_t = jnp.pad(x_t, ((0, 0), (0, padded - B)))            # zero angles -> harmless columns
    grid = (padded // tb,)

    const_specs = [pl.BlockSpec(c.shape, lambda i: (0, 0)) for c in consts]

    out_t = pl.pallas_call(
        hybrid_kernel,
        out_shape=jax.ShapeDtypeStruct((N_QUBITS, padded), jnp.float32),
        grid=grid,
        in_specs=[pl.BlockSpec((N_QUBITS, tb), lambda i: (0, i))] + const_specs,
        out_specs=pl.BlockSpec((N_QUBITS, tb), lambda i: (0, i)),
        compiler_params=pltpu.CompilerParams(dimension_semantics=("parallel",)),
    )(x_t, *consts)
    return out_t.T[:B]


# ----------------------------------------------------------------------------
# Pure-JAX gate-by-gate reference (PennyLane semantics) for correctness check.
# ----------------------------------------------------------------------------
def hybrid_reference(x, q_weights, w1, b1, w2, b2):
    xorm, cnotm = _gate_tables()
    B = x.shape[0]
    lane = jnp.arange(DIM)[None, :]
    re = (lane == 0).astype(jnp.float32) * jnp.ones((B, 1), jnp.float32)
    im = jnp.zeros((B, DIM), jnp.float32)

    def rx(re, im, c, s, q):
        re_p, im_p = re @ xorm[q], im @ xorm[q]
        return c * re + s * im_p, c * im - s * re_p

    cx, sx = jnp.cos(x * 0.5), jnp.sin(x * 0.5)
    for q in range(N_QUBITS):
        re, im = rx(re, im, cx[:, q:q + 1], sx[:, q:q + 1], q)
    cw, sw = jnp.cos(q_weights * 0.5), jnp.sin(q_weights * 0.5)
    for l in range(N_LAYERS):
        for q in range(N_QUBITS):
            re, im = rx(re, im, cw[l, q], sw[l, q], q)
        for q in range(N_QUBITS):
            re, im = re @ cnotm[q], im @ cnotm[q]
    idx = jnp.arange(DIM)
    zsign = jnp.stack([1.0 - 2.0 * ((idx >> (N_QUBITS - 1 - q)) & 1)
                       for q in range(N_QUBITS)], axis=1).astype(jnp.float32)
    q_out = (re * re + im * im) @ zsign
    h = jnp.maximum(q_out @ w1.T + b1, 0.0)
    return h @ w2.T + b2


if __name__ == "__main__":
    key = jax.random.PRNGKey(0)
    kx, kq, kw1, kb1, kw2, kb2 = jax.random.split(key, 6)

    batch = 2
    x = jax.random.uniform(kx, (batch, N_QUBITS), jnp.float32,
                           minval=0.0, maxval=math.pi)
    q_weights = jax.random.uniform(kq, (N_LAYERS, N_QUBITS), jnp.float32,
                                   minval=0.0, maxval=2.0 * math.pi)
    bound = 1.0 / math.sqrt(N_QUBITS)
    w1 = jax.random.uniform(kw1, (4, N_QUBITS), jnp.float32, minval=-bound, maxval=bound)
    b1 = jax.random.uniform(kb1, (4,), jnp.float32, minval=-bound, maxval=bound)
    w2 = jax.random.uniform(kw2, (4, 4), jnp.float32, minval=-0.5, maxval=0.5)
    b2 = jax.random.uniform(kb2, (4,), jnp.float32, minval=-0.5, maxval=0.5)

    out = jax.block_until_ready(hybrid_forward(x, q_weights, w1, b1, w2, b2))
    ref = hybrid_reference(x, q_weights, w1, b1, w2, b2)
    assert out.shape == (batch, 4)
    assert jnp.allclose(out, ref, rtol=1e-4, atol=1e-4), (out, ref)

    # Exercise multi-tile grid + ragged batch padding (3 tiles of 128, 84 pad cols).
    x_big = jax.random.uniform(jax.random.PRNGKey(1), (300, N_QUBITS), jnp.float32,
                               minval=0.0, maxval=math.pi)
    out_big = jax.block_until_ready(
        hybrid_forward(x_big, q_weights, w1, b1, w2, b2, tile_b=128))
    ref_big = hybrid_reference(x_big, q_weights, w1, b1, w2, b2)
    assert out_big.shape == (300, 4)
    assert jnp.allclose(out_big, ref_big, rtol=1e-4, atol=1e-4)

    # Default (large-tile) path on the same batch: auto-splits into >=2 programs.
    out_big2 = jax.block_until_ready(hybrid_forward(x_big, q_weights, w1, b1, w2, b2))
    assert jnp.allclose(out_big2, ref_big, rtol=1e-4, atol=1e-4)

    print("KERNEL_OK")
</pallas_src>

<mosaic_0001>
module attributes {stable_mosaic.version = 11 : i64} {
  func.func @hybrid_kernel(%arg0: i32, %arg1: memref<4x128xf32, #tpu.memory_space<vmem>>, %arg2: memref<32x4xf32, #tpu.memory_space<vmem>>, %arg3: memref<32x32xf32, #tpu.memory_space<vmem>>, %arg4: memref<4x32xf32, #tpu.memory_space<vmem>>, %arg5: memref<4x1xf32, #tpu.memory_space<vmem>>, %arg6: memref<4x4xf32, #tpu.memory_space<vmem>>, %arg7: memref<4x1xf32, #tpu.memory_space<vmem>>, %arg8: memref<4x128xf32, #tpu.memory_space<vmem>>) attributes {dimension_semantics = [#tpu.dimension_semantics<parallel>], iteration_bounds = array<i64: 1>, scalar_prefetch = 0 : i64, scratch_operands = 0 : i64, tpu.core_type = #tpu.core_type<tc>, window_params = [{transform_indices = @transform_0, window_bounds = array<i64: 4, 128>}, {pipeline_mode = #tpu.pipeline_mode<synchronous>, transform_indices = @transform_1, window_bounds = array<i64: 32, 4>}, {pipeline_mode = #tpu.pipeline_mode<synchronous>, transform_indices = @transform_2, window_bounds = array<i64: 32, 32>}, {pipeline_mode = #tpu.pipeline_mode<synchronous>, transform_indices = @transform_3, window_bounds = array<i64: 4, 32>}, {pipeline_mode = #tpu.pipeline_mode<synchronous>, transform_indices = @transform_4, window_bounds = array<i64: 4, 1>}, {pipeline_mode = #tpu.pipeline_mode<synchronous>, transform_indices = @transform_5, window_bounds = array<i64: 4, 4>}, {pipeline_mode = #tpu.pipeline_mode<synchronous>, transform_indices = @transform_6, window_bounds = array<i64: 4, 1>}, {transform_indices = @transform_7, window_bounds = array<i64: 4, 128>}]} {
    %c0 = arith.constant 0 : index
    %c0_0 = arith.constant 0 : index
    %0 = vector.load %arg1[%c0, %c0_0] : memref<4x128xf32, #tpu.memory_space<vmem>>, vector<4x128xf32>
    %cst = arith.constant 5.000000e-01 : f32
    %1 = vector.broadcast %cst : f32 to vector<4x128xf32>
    %2 = arith.mulf %0, %1 : vector<4x128xf32>
    %3 = math.cos %2 : vector<4x128xf32>
    %cst_1 = arith.constant 5.000000e-01 : f32
    %4 = vector.broadcast %cst_1 : f32 to vector<4x128xf32>
    %5 = arith.mulf %0, %4 : vector<4x128xf32>
    %6 = math.sin %5 : vector<4x128xf32>
    %7 = arith.subf %6, %3 : vector<4x128xf32>
    %c0_2 = arith.constant 0 : index
    %c0_3 = arith.constant 0 : index
    %8 = vector.load %arg2[%c0_2, %c0_3] : memref<32x4xf32, #tpu.memory_space<vmem>>, vector<32x4xf32>
    %9 = vector.extract_strided_slice %3 {offsets = [0, 0], sizes = [1, 128], strides = [1, 1]} : vector<4x128xf32> to vector<1x128xf32>
    %10 = vector.extract_strided_slice %7 {offsets = [0, 0], sizes = [1, 128], strides = [1, 1]} : vector<4x128xf32> to vector<1x128xf32>
    %11 = vector.extract_strided_slice %8 {offsets = [0, 0], sizes = [32, 1], strides = [1, 1]} : vector<32x4xf32> to vector<32x1xf32>
    %12 = vector.broadcast %10 : vector<1x128xf32> to vector<32x128xf32>
    %13 = vector.broadcast %11 : vector<32x1xf32> to vector<32x128xf32>
    %14 = arith.mulf %12, %13 : vector<32x128xf32>
    %15 = vector.broadcast %9 : vector<1x128xf32> to vector<32x128xf32>
    %16 = arith.addf %15, %14 : vector<32x128xf32>
    %17 = vector.extract_strided_slice %3 {offsets = [1, 0], sizes = [1, 128], strides = [1, 1]} : vector<4x128xf32> to vector<1x128xf32>
    %18 = vector.extract_strided_slice %7 {offsets = [1, 0], sizes = [1, 128], strides = [1, 1]} : vector<4x128xf32> to vector<1x128xf32>
    %19 = vector.extract_strided_slice %8 {offsets = [0, 1], sizes = [32, 1], strides = [1, 1]} : vector<32x4xf32> to vector<32x1xf32>
    %20 = vector.broadcast %18 : vector<1x128xf32> to vector<32x128xf32>
    %21 = vector.broadcast %19 : vector<32x1xf32> to vector<32x128xf32>
    %22 = arith.mulf %20, %21 : vector<32x128xf32>
    %23 = vector.broadcast %17 : vector<1x128xf32> to vector<32x128xf32>
    %24 = arith.addf %23, %22 : vector<32x128xf32>
    %25 = arith.mulf %16, %24 : vector<32x128xf32>
    %26 = vector.extract_strided_slice %3 {offsets = [2, 0], sizes = [1, 128], strides = [1, 1]} : vector<4x128xf32> to vector<1x128xf32>
    %27 = vector.extract_strided_slice %7 {offsets = [2, 0], sizes = [1, 128], strides = [1, 1]} : vector<4x128xf32> to vector<1x128xf32>
    %28 = vector.extract_strided_slice %8 {offsets = [0, 2], sizes = [32, 1], strides = [1, 1]} : vector<32x4xf32> to vector<32x1xf32>
    %29 = vector.broadcast %27 : vector<1x128xf32> to vector<32x128xf32>
    %30 = vector.broadcast %28 : vector<32x1xf32> to vector<32x128xf32>
    %31 = arith.mulf %29, %30 : vector<32x128xf32>
    %32 = vector.broadcast %26 : vector<1x128xf32> to vector<32x128xf32>
    %33 = arith.addf %32, %31 : vector<32x128xf32>
    %34 = arith.mulf %25, %33 : vector<32x128xf32>
    %35 = vector.extract_strided_slice %3 {offsets = [3, 0], sizes = [1, 128], strides = [1, 1]} : vector<4x128xf32> to vector<1x128xf32>
    %36 = vector.extract_strided_slice %7 {offsets = [3, 0], sizes = [1, 128], strides = [1, 1]} : vector<4x128xf32> to vector<1x128xf32>
    %37 = vector.extract_strided_slice %8 {offsets = [0, 3], sizes = [32, 1], strides = [1, 1]} : vector<32x4xf32> to vector<32x1xf32>
    %38 = vector.broadcast %36 : vector<1x128xf32> to vector<32x128xf32>
    %39 = vector.broadcast %37 : vector<32x1xf32> to vector<32x128xf32>
    %40 = arith.mulf %38, %39 : vector<32x128xf32>
    %41 = vector.broadcast %35 : vector<1x128xf32> to vector<32x128xf32>
    %42 = arith.addf %41, %40 : vector<32x128xf32>
    %43 = arith.mulf %34, %42 : vector<32x128xf32>
    %c0_4 = arith.constant 0 : index
    %c0_5 = arith.constant 0 : index
    %44 = vector.load %arg3[%c0_4, %c0_5] : memref<32x32xf32, #tpu.memory_space<vmem>>, vector<32x32xf32>
    %cst_6 = arith.constant dense<0.000000e+00> : vector<32x128xf32>
    %45 = tpu.matmul %44, %43, %cst_6 {dimension_numbers = #tpu.dot_dimension_numbers<[1], [0], [0], [1], [0, 0, 1, 1], [], []>} : vector<32x32xf32>, vector<32x128xf32>, vector<32x128xf32> -> vector<32x128xf32>
    %46 = arith.mulf %45, %45 : vector<32x128xf32>
    %c0_7 = arith.constant 0 : index
    %c0_8 = arith.constant 0 : index
    %47 = vector.load %arg4[%c0_7, %c0_8] : memref<4x32xf32, #tpu.memory_space<vmem>>, vector<4x32xf32>
    %cst_9 = arith.constant dense<0.000000e+00> : vector<4x128xf32>
    %48 = tpu.matmul %47, %46, %cst_9 {dimension_numbers = #tpu.dot_dimension_numbers<[1], [0], [0], [1], [0, 0, 1, 1], [], []>} : vector<4x32xf32>, vector<32x128xf32>, vector<4x128xf32> -> vector<4x128xf32>
    %c0_10 = arith.constant 0 : index
    %c0_11 = arith.constant 0 : index
    %49 = vector.load %arg5[%c0_10, %c0_11] : memref<4x1xf32, #tpu.memory_space<vmem>>, vector<4x1xf32>
    %50 = vector.broadcast %49 : vector<4x1xf32> to vector<4x128xf32>
    %51 = arith.addf %48, %50 : vector<4x128xf32>
    %cst_12 = arith.constant 0.000000e+00 : f32
    %52 = vector.broadcast %cst_12 : f32 to vector<4x128xf32>
    %53 = arith.maximumf %51, %52 : vector<4x128xf32>
    %c0_13 = arith.constant 0 : index
    %c0_14 = arith.constant 0 : index
    %54 = vector.load %arg6[%c0_13, %c0_14] : memref<4x4xf32, #tpu.memory_space<vmem>>, vector<4x4xf32>
    %cst_15 = arith.constant dense<0.000000e+00> : vector<4x128xf32>
    %55 = tpu.matmul %54, %53, %cst_15 {dimension_numbers = #tpu.dot_dimension_numbers<[1], [0], [0], [1], [0, 0, 1, 1], [], []>} : vector<4x4xf32>, vector<4x128xf32>, vector<4x128xf32> -> vector<4x128xf32>
    %c0_16 = arith.constant 0 : index
    %c0_17 = arith.constant 0 : index
    %56 = vector.load %arg7[%c0_16, %c0_17] : memref<4x1xf32, #tpu.memory_space<vmem>>, vector<4x1xf32>
    %57 = vector.broadcast %56 : vector<4x1xf32> to vector<4x128xf32>
    %58 = arith.addf %55, %57 : vector<4x128xf32>
    %c0_18 = arith.constant 0 : index
    %c0_19 = arith.constant 0 : index
    %59 = vector.load %arg8[%c0_18, %c0_19] : memref<4x128xf32, #tpu.memory_space<vmem>>, vector<4x128xf32>
    tpu.vector_store %arg8[%c0_18, %c0_19], %58 {strides = array<i32>} : memref<4x128xf32, #tpu.memory_space<vmem>>, vector<4x128xf32>,
    return
  }
  func.func @transform_0(%arg0: i32) -> (i32, i32) {
    %c0_i32 = arith.constant 0 : i32
    %c0_i32_0 = arith.constant 0 : i32
    return %c0_i32, %arg0 : i32, i32
  }
  func.func @transform_1(%arg0: i32) -> (i32, i32) {
    %c0_i32 = arith.constant 0 : i32
    %c0_i32_0 = arith.constant 0 : i32
    %c0_i32_1 = arith.constant 0 : i32
    return %c0_i32, %c0_i32_0 : i32, i32
  }
  func.func @transform_2(%arg0: i32) -> (i32, i32) {
    %c0_i32 = arith.constant 0 : i32
    %c0_i32_0 = arith.constant 0 : i32
    %c0_i32_1 = arith.constant 0 : i32
    return %c0_i32, %c0_i32_0 : i32, i32
  }
  func.func @transform_3(%arg0: i32) -> (i32, i32) {
    %c0_i32 = arith.constant 0 : i32
    %c0_i32_0 = arith.constant 0 : i32
    %c0_i32_1 = arith.constant 0 : i32
    return %c0_i32, %c0_i32_0 : i32, i32
  }
  func.func @transform_4(%arg0: i32) -> (i32, i32) {
    %c0_i32 = arith.constant 0 : i32
    %c0_i32_0 = arith.constant 0 : i32
    %c0_i32_1 = arith.constant 0 : i32
    return %c0_i32, %c0_i32_0 : i32, i32
  }
  func.func @transform_5(%arg0: i32) -> (i32, i32) {
    %c0_i32 = arith.constant 0 : i32
    %c0_i32_0 = arith.constant 0 : i32
    %c0_i32_1 = arith.constant 0 : i32
    return %c0_i32, %c0_i32_0 : i32, i32
  }
  func.func @transform_6(%arg0: i32) -> (i32, i32) {
    %c0_i32 = arith.constant 0 : i32
    %c0_i32_0 = arith.constant 0 : i32
    %c0_i32_1 = arith.constant 0 : i32
    return %c0_i32, %c0_i32_0 : i32, i32
  }
  func.func @transform_7(%arg0: i32) -> (i32, i32) {
    %c0_i32 = arith.constant 0 : i32
    %c0_i32_0 = arith.constant 0 : i32
    return %c0_i32, %arg0 : i32, i32
  }
}

</mosaic_0001>

<bundles_post_ra>
// kernel: tpu_custom_call.1
= control target key start
LH: loop header
LB: loop body
LE: loop exit
PB: predicated region body
PF: predicated region fallthrough
CT: control target
= control target key end

     0   :  { %v804_v1 = vmov 1   ;;  %v805_v2 = vmov 0   ;;  %s974_s0 = inlined_call_operand.vmem [shape: f32[4,128], index: 0, kind: input, shape index: {}]   ;;  %s975_s1 = inlined_call_operand.vmem [shape: f32[32,4], index: 1, kind: input, shape index: {}]   ;;  %s976_s2 = inlined_call_operand.vmem [shape: f32[32,32], index: 2, kind: input, shape index: {}]   ;;  %s977_s3 = inlined_call_operand.vmem [shape: f32[4,32], index: 3, kind: input, shape index: {}]   ;;  %s978_s4 = inlined_call_operand.vmem [shape: f32[4,1], index: 4, kind: input, shape index: {}]   ;;  %s979_s5 = inlined_call_operand.vmem [shape: f32[4,4], index: 5, kind: input, shape index: {}]   ;;  %s980_s6 = inlined_call_operand.vmem [shape: f32[4,1], index: 6, kind: input, shape index: {}]   ;;  %s981_s7 = inlined_call_operand.hbm [shape: f32[4,128], index: 7, kind: output, shape index: {}]  }
   0x1   :  { %v237_v0 = vld [vmem:[%s975_s1] sm:$0xff]  ;;  %765 = vset.pattern.permute.xlu1 %v804_v1  ;;  %764 = vset.pattern.permute.xlu0 %v805_v2  ;;  %v870_v5 = vld [vmem:[%s975_s1 + $0x8] sm:$0xff] }
   0x2   :  { %v27_v3 = vld [vmem:[%s974_s0] sm:$0xf]  ;;  %282 = vperm.xlu1 %765, %v237_v0   ;;  %247 = vperm.xlu0 %764, %v237_v0  }
   0x3   :  { %v865_v4 = vmul.f32 0.5, %v27_v3 }
   0x5   :  { %v32_v6 = vand.u32 2139095040, %v865_v4 }
   0x6   :  { %12 = vsyncpa [#allocation3], 0  ;;  %286 = vperm.xlu1 %765, %v870_v5   ;;  %252 = vperm.xlu0 %764, %v870_v5   ;;  %v878_v8 = vld [vmem:[%s975_s1 + $0x18] sm:$0xff]  ;;  %v806_v10 = vmov 2   ;;  %v29_v11 = vand.u32 2147483647, %v865_v4 }
   0x7   :  { %v33_v7 = vshrl.u32 %v32_v6, 23  ;;  %v887_v13 = vld [vmem:[%s975_s1 + $0x10] sm:$0xff]  ;;  %v807_v15 = vmov 3   ;;  %v808_v20 = vmov 683565275   ;;  %v385_v6 = vld [vmem:[%s976_s2] sm:$0xff] }
   0x8   :  { %v36_v16 = vand.u32 8388607, %v29_v11  ;;  %v809_v22 = vmov 2475754826   ;;  %v810_v24 = vmov 2131351028  }
   0x9   :  { %v672_v9 = vadd.s32 4294967169, %v33_v7  ;;  %v811_v26 = vmov 2102212464   ;;  %v812_v28 = vmov 920167782   ;;  %vm389_vm6 = vcmask 261120  }
   0xa   :  { %766 = vset.pattern.permute.xlu1 %v806_v10  ;;  %262 = vperm.xlu0 %764, %v878_v8   ;;  %v37_v30 = vor.u32 8388608, %v36_v16  ;;  %v813_v35 = vmov 1326507024   ;;  %vm31_vm8 = vcmp.lt.s32.totalorder %v865_v4, 0  ;;  %vm30_vm9 = vcmp.le.f32.partialorder %v29_v11, 0.7853982 }
   0xb   :  { %v39_v12 = vadd.s32 1, %v672_v9  ;;  %322 = vperm.xlu1 %766, %v870_v5   ;;  %710 = vmatprep.mubr.msk.f32.mxu0 %vm389_vm6, %v385_v6 }
   0xc   :  { %v77_v44 = vshll.u32 %v37_v30, 8 }
   0xd   :  { %vm40_vm0 = vcmp.gt.s32.totalorder %v39_v12, 0 }
   0xe   :  { %v41_v14 = vsel %vm40_vm0, %v39_v12, 0  ;;  %769 = vset.pattern.permute.xlu0 %v807_v15  ;;  %vm121_vm0 = vweird.f32 %v865_v4 }
   0xf   :  { %v43_v17 = vand.u32 31, %v41_v14  ;;  %767 = vset.pattern.permute.xlu1 %v805_v2  ;;  %354 = vperm.xlu0 %769, %v237_v0   ;;  %v42_v18 = vshrl.u32 %v41_v14, 5 }
  0x10   :  { %257 = vperm.xlu1 %767, %v887_v13  }
  0x11   :  { %v44_v19 = vsub.s32 32, %v43_v17  ;;  %v46_v21 = vshll.u32 %v808_v20, %v43_v17  ;;  %v49_v23 = vshll.u32 %v809_v22, %v43_v17  ;;  %v52_v25 = vshll.u32 %v810_v24, %v43_v17 }
  0x12   :  { %v55_v27 = vshll.u32 %v811_v26, %v43_v17  ;;  %v58_v29 = vshll.u32 %v812_v28, %v43_v17  ;;  %vm61_vm1 = vcmp.lt.s32.totalorder %v42_v18, 1  ;;  %vm64_vm2 = vcmp.lt.s32.totalorder %v42_v18, 4 }
  0x13   :  { %v47_v31 = vshrl.u32 %v809_v22, %v44_v19  ;;  %v50_v32 = vshrl.u32 %v810_v24, %v44_v19  ;;  %v53_v33 = vshrl.u32 %v811_v26, %v44_v19  ;;  %770 = vset.pattern.permute.xlu0 %v806_v10  ;;  %v56_v34 = vshrl.u32 %v812_v28, %v44_v19 }
  0x14   :  { %v59_v36 = vshrl.u32 %v813_v35, %v44_v19  ;;  %768 = vset.pattern.permute.xlu1 %v804_v1  ;;  %318 = vperm.xlu0 %770, %v237_v0   ;;  %vm63_vm3 = vcmp.lt.s32.totalorder %v42_v18, 3  ;;  %vm62_vm4 = vcmp.lt.s32.totalorder %v42_v18, 2  ;;  %v45_v45 = vshrl.u32 %v808_v20, %v44_v19 }
  0x15   :  { %v48_v37 = vor.u32 %v47_v31, %v46_v21  ;;  %v51_v38 = vor.u32 %v50_v32, %v49_v23  ;;  %v54_v39 = vor.u32 %v53_v33, %v52_v25  ;;  %290 = vperm.xlu1 %768, %v887_v13   ;;  %v57_v40 = vor.u32 %v56_v34, %v55_v27 }
  0x16   :  { %v60_v41 = vor.u32 %v59_v36, %v58_v29 }
  0x17   :  { %v69_v42 = vsel %vm61_vm1, %v48_v37, %v51_v38  ;;  %v73_v43 = vsel %vm61_vm1, %v51_v38, %v54_v39  ;;  %v70_v46 = vsel %vm64_vm2, %v57_v40, 920167782  ;;  %v66_v48 = vsel %vm64_vm2, %v54_v39, 2102212464 }
  0x18   :  { %v74_v47 = vsel %vm64_vm2, %v60_v41, 1326507024  ;;  %330 = vperm.xlu0 %770, %v878_v8   ;;  %v71_v49 = vsel %vm63_vm3, %v54_v39, %v70_v46  ;;  %v65_v57 = vsel %vm61_vm1, %v45_v45, %v48_v37  ;;  %v67_v58 = vsel %vm63_vm3, %v51_v38, %v66_v48 }
  0x19   :  { %v75_v50 = vsel %vm63_vm3, %v57_v40, %v74_v47  ;;  %294 = vperm.xlu1 %768, %v878_v8   ;;  %v72_v51 = vsel %vm62_vm4, %v69_v42, %v71_v49  ;;  %v68_v59 = vsel %vm62_vm4, %v65_v57, %v67_v58  ;;  %v241_v42 = vlaneseq }
  0x1a   :  { %v76_v52 = vsel %vm62_vm4, %v73_v43, %v75_v50  ;;  %v907_v55 = vmul.u32.u64.low %v77_v44, %v72_v51  ;;  %v908_v56 = vmul.u32.u64.high %v77_v44, %v72_v51, %v907_v55  ;;  %v84_v61 = vmul.u32 %v77_v44, %v68_v59 }
  0x1b   :  { %v904_v53 = vmul.u32.u64.low %v77_v44, %v76_v52  ;;  %v905_v54 = vmul.u32.u64.high %v77_v44, %v76_v52, %v904_v53  ;;  %v242_v47 = vshrl.u32 %v241_v42, 7  ;;  %vm815_vm1 = vmmov 0  }
  0x1c   :  { %774 = vset.pattern.permute.xlu0 %v805_v2  ;;  %v87_v60 = vadd.s32 1, %v908_v56  ;;  %vm583_vm2 = vcmask 1043456   ;;  %vm579_vm3 = vcmask 31744  }
  0x1d   :  { %771 = vset.pattern.permute.xlu1 %v807_v15  ;;  %vm86_vm5 = vc.u32 %v905_v54, %v907_v55  ;;  %v279_v52 = vsub.s32 1, %v242_v47  ;;  %v315_v59 = vsub.s32 2, %v242_v47 }
  0x1e   :  { %358 = vperm.xlu1 %771, %v870_v5   ;;  %v88_v62 = vsel %vm86_vm5, %v87_v60, %v908_v56  ;;  %v351_v60 = vsub.s32 3, %v242_v47 }
  0x1f   :  { %v89_v63 = vadd.s32 %v88_v62, %v84_v61 }
  0x21   :  { %v90_v0 = vadd.s32 536870912, %v89_v63 }
  0x22   :  { %772 = vset.pattern.permute.xlu1 %v806_v10 }
  0x23   :  { %326 = vperm.xlu1 %772, %v887_v13   ;;  %v91_v1 = vshrl.u32 %v90_v0, 30 }
  0x25   :  { %v92_v3 = vshll.u32 %v91_v1, 30  ;;  %v115_v26 = vsub.s32 4, %v91_v1 }
  0x27   :  { %773 = vset.pattern.permute.xlu1 %v807_v15  ;;  %v93_v5 = vsub.s32 %v89_v63, %v92_v3  ;;  %v116_v28 = vsel %vm31_vm8, %v115_v26, %v91_v1 }
  0x28   :  { %362 = vperm.xlu1 %773, %v887_v13   ;;  %v118_v29 = vsel %vm30_vm9, 0, %v116_v28 }
  0x29   :  { %v95_v7 = vsub.s32 0, %v93_v5  ;;  %v225_v30 = vadd.s32 3, %v118_v29  ;;  %v122_v33 = vand.u32 3, %v118_v29 }
  0x2b   :  { %v673_v9 = vmin.u32 %v95_v7, %v93_v5  ;;  %v226_v34 = vand.u32 3, %v225_v30  ;;  %vm124_vm10 = vcmp.eq.s32.totalorder %v122_v33, 0  ;;  %vm127_vm11 = vcmp.eq.s32.totalorder %v122_v33, 2 }
  0x2c   :  { %366 = vperm.xlu1 %773, %v878_v8   ;;  %v85_v8 = vadd.s32 %v907_v55, %v905_v54  ;;  %vm123_vm14 = vcmp.lt.s32.totalorder %v122_v33, 2  ;;  %v243_v54 = vsub.s32 0, %v242_v47 }
  0x2d   :  { %v97_v10 = vclz %v673_v9  ;;  %vm228_vm12 = vcmp.eq.s32.totalorder %v226_v34, 0  ;;  %vm231_vm13 = vcmp.eq.s32.totalorder %v226_v34, 2  ;;  %vm227_vm15 = vcmp.lt.s32.totalorder %v226_v34, 2 }
  0x2f   :  { %v674_v12 = vadd.s32 4294967294, %v97_v10 }
  0x30   :  { %775 = vset.pattern.permute.xlu1 %v805_v2 }
  0x31   :  { %vm675_vm7 = vcmp.lt.s32.totalorder %v674_v12, 0 }
  0x32   :  { %v100_v13 = vsel %vm675_vm7, 0, %v674_v12 }
  0x33   :  { %v105_v14 = vsub.s32 4294967266, %v100_v13  ;;  %v101_v15 = vsub.s32 32, %v100_v13  ;;  %v102_v16 = vshll.u32 %v93_v5, %v100_v13 }
  0x35   :  { %v106_v2 = vadd.s32 127, %v105_v14  ;;  %v103_v17 = vshrl.u32 %v85_v8, %v101_v15 }
  0x37   :  { %v107_v18 = vshll.u32 %v106_v2, 23  ;;  %v104_v19 = vor.u32 %v103_v17, %v102_v16 }
  0x39   :  { %v108_v20 = vor.u32 4788187, %v107_v18  ;;  %v111_v22 = vcvt.s32.f32 %v104_v19 }
  0x3b   :  { %v109_v21 = vand.u32 2147483647, %v108_v20 }
  0x3d   :  { %v112_v23 = vmul.f32 %v111_v22, %v109_v21 }
  0x3f   :  { %v113_v24 = vxor.u32 2147483648, %v112_v23 }
  0x41   :  { %v114_v25 = vsel %vm31_vm8, %v113_v24, %v112_v23 }
  0x42   :  { %v117_v27 = vsel %vm30_vm9, %v865_v4, %v114_v25 }
  0x43   :  { %776 = vcosq.f32 %v117_v27 }
  0x44   :  { %778 = vsinq.f32 %v117_v27 }
  0x4d   :  { %v777_v31 = vpop.eup %776 }
  0x4e   :  { %v779_v32 = vpop.eup %778  ;;  %v128_v36 = vxor.u32 2147483648, %v777_v31 }
  0x4f   :  { %v125_v35 = vxor.u32 2147483648, %v779_v32 }
  0x50   :  { %v129_v39 = vsel %vm127_vm11, %v128_v36, %v779_v32  ;;  %v233_v41 = vsel %vm231_vm13, %v128_v36, %v779_v32 }
  0x51   :  { %v126_v38 = vsel %vm124_vm10, %v777_v31, %v125_v35  ;;  %v230_v40 = vsel %vm228_vm12, %v777_v31, %v125_v35 }
  0x52   :  { %v130_v45 = vsel %vm123_vm14, %v126_v38, %v129_v39  ;;  %v234_v46 = vsel %vm227_vm15, %v230_v40, %v233_v41 }
  0x53   :  { %v131_v48 = vsel %vm121_vm0, nan, %v130_v45  ;;  %v235_v49 = vsel %vm121_vm0, nan, %v234_v46 }
  0x54   :  { %v236_v53 = vsub.f32 %v235_v49, %v131_v48  ;;  %v304_v61 = vrot.slane %v131_v48, %v279_v52  ;;  %v272_v0 = vrot.slane %v131_v48, %v243_v54  ;;  %v340_v14 = vrot.slane %v131_v48, %v315_v59 }
  0x55   :  { %v376_v15 = vrot.slane %v131_v48, %v351_v60 }
  0x56   :  { %v280_v57 = vrot.slane %v236_v53, %v279_v52  ;;  %v244_v58 = vrot.slane %v236_v53, %v243_v54  ;;  %v316_v1 = vrot.slane %v236_v53, %v315_v59  ;;  %v352_v7 = vrot.slane %v236_v53, %v351_v60  ;;  %v388_v59 = vld [vmem:[%s976_s2 + $0x18] sm:$0xff] }
  0x57   :  { %v814_v60 = vmov 0.0|0.0  }
  0x58   :  { %740 = vmatprep.subr.bf16.mxu1 %v814_v60 }
  0x81   :  { %v283_v11 = vpop.permute.xlu1 %282  ;;  %v248_v37 = vpop.permute.xlu0 %247 }
  0x82   :  { %v297_v63 = vmul.f32 %v283_v11, %v280_v57  ;;  %v265_v4 = vmul.f32 %v248_v37, %v244_v58 }
  0x84   :  { %v305_v10 = vadd.f32 %v304_v61, %v297_v63  ;;  %v273_v12 = vadd.f32 %v272_v0, %v265_v4 }
  0x85   :  { %v287_v43 = vpop.permute.xlu1 %286  ;;  %v253_v44 = vpop.permute.xlu0 %252 }
  0x86   :  { %v298_v5 = vmul.f32 %v287_v43, %v280_v57  ;;  %v266_v6 = vmul.f32 %v253_v44, %v244_v58  ;;  %v309_v19 = vmul.f32 %v305_v10, %v273_v12  ;;  %v491_v12 = vld [vmem:[%s977_s3] sm:$0xf]  ;;  %s817_s3 = smov [#allocation2]  }
  0x87   :  { %s664_s23 = sshll.u32 %s817_s3, 4  ;;  %s665_s23 = int_to_ptr.vmem [resolvable:$true] %s664_s23 }
  0x88   :  { %v306_v2 = vadd.f32 %v304_v61, %v298_v5  ;;  %v274_v16 = vadd.f32 %v272_v0, %v266_v6  ;;  %p785_p1 = scmp.lt.s32.totalorder %s665_s23, %s665_s23 }
  0x89   :  { %v263_v50 = vpop.permute.xlu0 %262 }
  0x8a   :  { %v323_v51 = vpop.permute.xlu1 %322  ;;  %v310_v22 = vmul.f32 %v306_v2, %v274_v16  ;;  %v268_v33 = vmul.f32 %v263_v50, %v244_v58 }
  0x8b   :  { %v334_v13 = vmul.f32 %v323_v51, %v316_v1 }
  0x8c   :  { %v276_v40 = vadd.f32 %v272_v0, %v268_v33 }
  0x8d   :  { %v342_v20 = vadd.f32 %v340_v14, %v334_v13  ;;  %v573_v13 = vld [vmem:[%s980_s6] sm:$0xf]  ;;  %s780_s6 = scalar_lea.vmem %s665_s23, 64 }
  0x8e   :  { %v355_v55 = vpop.permute.xlu0 %354  ;;  %576 = vperm.xlu1 %775, %v573_v13   ;;  %p781_p0 = scmp.ne.s32.totalorder %s665_s23, %s780_s6  ;;  %p786_p2 = scmp.lt.s32.totalorder %s780_s6, %s780_s6 }
  0x8f   :  { %v258_v56 = vpop.permute.xlu1 %257  ;;  %v369_v17 = vmul.f32 %v355_v55, %v352_v7  ;;  %v346_v26 = vmul.f32 %v342_v20, %v310_v22 }
  0x90   :  { %v267_v36 = vmul.f32 %v258_v56, %v244_v58  ;;  %v387_v58 = vld [vmem:[%s976_s2 + $0x10] sm:$0xff]  ;;  %p787_p3 = por %p786_p2, %p785_p1 }
  0x91   :  { %v377_v23 = vadd.f32 %v376_v15, %v369_v17  ;;  %v572_v17 = vld [vmem:[%s979_s5] sm:$0xf] }
  0x92   :  { %v275_v43 = vadd.f32 %v272_v0, %v267_v36  ;;  %p788_p4 = pnand %p787_p3, %p781_p0 }
  0x93   :  { %v319_v62 = vpop.permute.xlu0 %318 }
  0x94   :  { %v291_v3 = vpop.permute.xlu1 %290  ;;  %v333_v9 = vmul.f32 %v319_v62, %v316_v1  ;;  %v492_v62 = vld [vmem:[%s978_s4] sm:$0xf] }
  0x95   :  { %v299_v34 = vmul.f32 %v291_v3, %v280_v57  ;;  %495 = vperm.xlu0 %774, %v492_v62  }
  0x96   :  { %v341_v18 = vadd.f32 %v340_v14, %v333_v9 }
  0x97   :  { %v331_v32 = vpop.permute.xlu0 %330  ;;  %v307_v41 = vadd.f32 %v304_v61, %v299_v34 }
  0x98   :  { %v295_v8 = vpop.permute.xlu1 %294  ;;  %v345_v24 = vmul.f32 %v341_v18, %v309_v19  ;;  %v336_v37 = vmul.f32 %v331_v32, %v316_v1 }
  0x99   :  { %v300_v28 = vmul.f32 %v295_v8, %v280_v57  ;;  %v311_v48 = vmul.f32 %v307_v41, %v275_v43  ;;  %v386_v57 = vld [vmem:[%s976_s2 + $0x8] sm:$0xff] }
  0x9a   :  { %v381_v30 = vmul.f32 %v377_v23, %v345_v24  ;;  %v344_v45 = vadd.f32 %v340_v14, %v336_v37 }
  0x9b   :  { %v308_v11 = vadd.f32 %v304_v61, %v300_v28  ;;  %v816_v61 = vmov 0.0  }
  0x9c   :  { %724 = vmatprep.mubr.msk.f32.mxu1 %vm815_vm1, %v816_v61 }
  0x9d   :  { %v359_v21 = vpop.permute.xlu1 %358  ;;  %v312_v44 = vmul.f32 %v308_v11, %v276_v40 }
  0x9e   :  { %v370_v25 = vmul.f32 %v359_v21, %v352_v7 }
  0x9f   :  { %v348_v51 = vmul.f32 %v344_v45, %v312_v44 }
  0xa0   :  { %v378_v27 = vadd.f32 %v376_v15, %v370_v25 }
  0xa2   :  { %v327_v29 = vpop.permute.xlu1 %326  ;;  %v382_v31 = vmul.f32 %v378_v27, %v346_v26 }
  0xa3   :  { %v335_v38 = vmul.f32 %v327_v29, %v316_v1 }
  0xa4   :  { %v732_v35 = vpack.c.bf16 %v382_v31, %v381_v30 }
  0xa5   :  { %v343_v46 = vadd.f32 %v340_v14, %v335_v38 }
  0xa6   :  { %733 = vmatprep.subr.bf16.mxu0 %v732_v35 }
  0xa7   :  { %v363_v39 = vpop.permute.xlu1 %362  ;;  %735 = vmatpush3.bf16.msra.mxu0 %v732_v35  ;;  %v347_v52 = vmul.f32 %v343_v46, %v311_v48 }
  0xa8   :  { %v371_v42 = vmul.f32 %v363_v39, %v352_v7 }
  0xaa   :  { %v379_v49 = vadd.f32 %v376_v15, %v371_v42 }
  0xab   :  { %v367_v47 = vpop.permute.xlu1 %366 }
  0xac   :  { %v372_v50 = vmul.f32 %v367_v47, %v352_v7  ;;  %v383_v54 = vmul.f32 %v379_v49, %v347_v52 }
  0xae   :  { %v380_v53 = vadd.f32 %v376_v15, %v372_v50 }
  0xb0   :  { %v384_v55 = vmul.f32 %v380_v53, %v348_v51 }
  0xb2   :  { %v736_v56 = vpack.c.bf16 %v384_v55, %v383_v54 }
  0xb4   :  { %737 = vmatprep.subr.bf16.mxu0 %v736_v56 }
  0xb5   :  { %739 = vmatpush3.bf16.msra.mxu0 %v736_v56 }
  0xb8   :  { %711 = vmatmul.mubr.msk.f32.vlgmr.msra.gmra.mrb[0].mxu0 %vm389_vm6, %v386_v57 }
  0xb9   :  { %713 = vmatprep.mubr.msk.f32.mxu0 %vm389_vm6, %v387_v58 }
  0xbc   :  { %714 = vmatmul.mubr.msk.f32.gmra.mrb[2].mxu0 %vm389_vm6, %v388_v59 }
 0x10d   :  { %v577_v18 = vpop.permute.xlu1 %576 }
 0x114   :  { %v496_v14 = vpop.permute.xlu0 %495 }
 0x18b   :  { %v712_v63 = vpop.f32.mrb[0].mxu0 }
 0x18c   :  { %v488_v4 = vmul.f32 %v712_v63, %v712_v63  ;;  %v468_v0 = vpop.f32.mrb[1].mxu0 }
 0x18d   :  { %v487_v1 = vmul.f32 %v468_v0, %v468_v0 }
 0x18f   :  { %v715_v3 = vpop.f32.mrb[2].mxu0  ;;  %v741_v5 = vpack.c.bf16 %v488_v4, %v487_v1 }
 0x190   :  { %v490_v6 = vmul.f32 %v715_v3, %v715_v3  ;;  %v478_v7 = vpop.f32.mrb[3].mxu0 }
 0x191   :  { %v489_v9 = vmul.f32 %v478_v7, %v478_v7  ;;  %742 = vmatpush3.bf16.msra.mxu1 %v741_v5 }
 0x192   :  { %743 = vmatprep.subr.bf16.mxu1 %v814_v60 }
 0x193   :  { %v744_v10 = vpack.c.bf16 %v490_v6, %v489_v9 }
 0x195   :  { %745 = vmatpush3.bf16.msra.mxu1 %v744_v10 }
 0x196   :  { %727 = vmatprep.subr.mxu1 %v816_v61 }
 0x198   :  { %725 = vmatmul.mubr.msk.f32.vlgmr.msra.gmra.mrb[0].mxu1 %vm389_vm6, %v491_v12 }
 0x199   :  { %729 = vmatprep.mubr.msk.f32.mxu1 %vm815_vm1, %v816_v61 }
 0x26b   :  { %v567_v8 = vpop.f32.mrb[0].mxu1 }
 0x26c   :  { %v568_v15 = vadd.f32 %v567_v8, %v496_v14  ;;  %v726_v2 = vpop.f32.mrb[1].mxu1 }
 0x26e   :  { %v571_v16 = vmax.f32 %v568_v15, 0.0 }
 0x270   :  { %728 = vmatpush3.msk.msra.mxu1 %vm583_vm2, %v571_v16 }
 0x271   :  { %730 = vmatmul.mubr.msk.f32.vlgmr.msra.gmra.mrb[2].mxu1 %vm579_vm3, %v572_v17 }
 0x344   :  { %v653_v19 = vpop.f32.mrb[2].mxu1 }
 0x345   :  { %v654_v20 = vadd.f32 %v653_v19, %v577_v18  ;;  %v731_v21 = vpop.f32.mrb[3].mxu1 }
 0x347   :  { %657 = vst [vmem:[#allocation2] sm:$0xf] %v654_v20 }
 0x348   :  { %791 = shalt.err (!%p788_p4)
}
 0x349   :  { %s792_s25 = scalar_lea.hbm %s981_s7, 64 }
 0x34a   :  { %p793_p5 = scmp.ne.s32.totalorder %s981_s7, %s792_s25  ;;  %p796_p6 = scmp.lt.u32.totalorder %s792_s25, %s981_s7 }
 0x34c   :  { %p798_p7 = pnand %p796_p6, %p793_p5 }
 0x34e   :  { %801 = shalt.err (!%p798_p7)
}
 0x34f   :  { %667 = dma.vmem_to_hbm [thread:$0]  %s665_s23, 64, %s981_s7, [#allocation3]  }
 0x350   :  { %802 = dma.done.wait [#allocation3], 64  }
 0x351   :  { %803 = vsyncadd [#allocation3], 4294967232 }
 0x352   :  { %671 = vsyncpa [#allocation3], 1 }

</bundles_post_ra>
